<compile_context>
chip_gen: v7x
topology: tpu7x:2x2x1
jax: 0.10.0
libtpu: 0.0.40
codegen_flags: <defaults>
</compile_context>

<pallas_src>
import functools

import jax
import jax.numpy as jnp
from jax.experimental import pallas as pl
from jax.experimental.pallas import tpu as pltpu

MARGIN = 0.2
EPS = 1e-6  # torch.nn.functional.pairwise_distance default eps


def _round_up(x, m):
    return ((x + m - 1) // m) * m


def _vmem_budget_bytes():
    """(input double-buffer budget, physical VMEM capacity) — generation aware."""
    vmem = None
    try:
        info = pltpu.get_tpu_info()
        vmem = int(getattr(info, "vmem_capacity_bytes", 0)) or None
    except Exception:
        vmem = None
    if vmem is None:
        vmem = 64 * 1024 * 1024  # conservative default (v7x per-TC)
    if vmem <= 64 * 1024 * 1024:
        # v7x: 64 MiB per TensorCore -> keep inputs <= ~24 MiB, leave headroom.
        budget = 24 * 1024 * 1024
    else:
        # v5e / v6e: 128 MiB physical -> bigger tiles, fewer grid steps.
        budget = 64 * 1024 * 1024
    return budget, vmem


def _pick_tile_b(B, D, itemsize, tile_b, budget):
    """Batch-tile size: multiple of 8, double-buffered inputs fit in budget."""
    b_pad8 = _round_up(max(B, 1), 8)
    if tile_b is not None:
        return max(8, min(_round_up(tile_b, 8), b_pad8))
    # 3 inputs x 2 pipeline buffers x TB * D * itemsize <= budget.
    tb = budget // (6 * max(D, 1) * itemsize)
    tb = max(8, (int(tb) // 8) * 8)
    # Keep >=2 balanced tiles so the parallel grid axis can feed both
    # TensorCores on v7x (cost elsewhere: one extra ~0.35us grid step).
    half = max(8, _round_up(pl.cdiv(B, 2), 8))
    tb = min(tb, half)
    return min(tb, b_pad8)


def _triplet_kernel(valid_b_ref, a_ref, p_ref, n_ref, o_ref, *, tile_b, margin):
    # (TB, D) tiles. Subtract in input dtype, accumulate squares in f32.
    a = a_ref[...]
    p = p_ref[...]
    n = n_ref[...]

    dp = (a - p).astype(jnp.float32) + EPS  # pairwise_distance adds eps to diff
    dn = (a - n).astype(jnp.float32) + EPS

    # keepdims=True: stay 2-D (TB, 1) to avoid 1-D relayouts.
    sq_pos = jnp.sum(dp * dp, axis=-1, keepdims=True)
    sq_neg = jnp.sum(dn * dn, axis=-1, keepdims=True)

    loss = jnp.maximum(jnp.sqrt(sq_pos) - jnp.sqrt(sq_neg) + margin, 0.0)  # (TB,1)

    # Always mask: the ragged last tile may contain garbage (even NaN/Inf) rows
    # past valid_b. A select is NaN-safe; do NOT turn this into a multiply.
    row = (pl.program_id(0) * tile_b
           + jax.lax.broadcasted_iota(jnp.int32, (tile_b, 1), 0))
    loss = jnp.where(row < valid_b_ref[0], loss, 0.0)

    partial = jnp.sum(loss)
    # Lane-dense, full-vreg (unmasked) store of the per-tile partial sum.
    o_ref[...] = jnp.full((1, 8, 128), partial, dtype=jnp.float32)


def triplet_loss(a, p, n, margin=MARGIN, reduction="sum", tile_b=None):
    assert a.shape == p.shape == n.shape and a.ndim == 2
    B, D = a.shape
    itemsize = jnp.dtype(a.dtype).itemsize

    budget, vmem_cap = _vmem_budget_bytes()
    TB = _pick_tile_b(B, D, itemsize, tile_b, budget)
    num_tiles = pl.cdiv(B, TB)

    kernel = functools.partial(_triplet_kernel, tile_b=TB, margin=float(margin))

    # index_maps receive the scalar-prefetch ref as a trailing positional arg.
    in_spec = pl.BlockSpec((TB, D), lambda i, vb: (i, 0))
    out_spec = pl.BlockSpec((1, 8, 128), lambda i, vb: (i, 0, 0))

    # Explicit scoped-VMEM limit: double-buffered inputs + headroom for the
    # output buffers and compiler internal scratch; never above physical VMEM.
    vmem_limit = int(min(vmem_cap,
                         max(16 << 20, 6 * TB * D * itemsize + (8 << 20))))

    partials = pl.pallas_call(
        kernel,
        out_shape=jax.ShapeDtypeStruct((num_tiles, 8, 128), jnp.float32),
        grid_spec=pltpu.PrefetchScalarGridSpec(
            num_scalar_prefetch=1,
            grid=(num_tiles,),
            in_specs=[in_spec, in_spec, in_spec],
            out_specs=out_spec,
        ),
        compiler_params=pltpu.CompilerParams(
            dimension_semantics=("parallel",),
            vmem_limit_bytes=vmem_limit,
        ),
        cost_estimate=pl.CostEstimate(
            flops=5 * B * D,
            transcendentals=2 * B,
            bytes_accessed=3 * B * D * itemsize + num_tiles * 8 * 128 * 4 + 4,
        ),
    )(jnp.asarray([B], jnp.int32), a, p, n)

    total = jnp.sum(partials[:, 0, 0])
    if reduction == "sum":
        return total
    elif reduction == "mean":
        return total / B
    else:
        raise NotImplementedError


def triplet_loss_ref(a, p, n, margin=MARGIN):
    # Pure-JAX reference for verification (matches F.pairwise_distance numerics).
    d_pos = jnp.sqrt(jnp.sum((a - p + EPS) ** 2, axis=-1))
    d_neg = jnp.sqrt(jnp.sum((a - n + EPS) ** 2, axis=-1))
    return jnp.sum(jnp.maximum(d_pos - d_neg + margin, 0.0))


if __name__ == "__main__":
    # Case 1: single-tile path.
    key = jax.random.PRNGKey(0)
    ka, kp, kn = jax.random.split(key, 3)
    B, D = 8, 32
    a = jax.random.normal(ka, (B, D), dtype=jnp.float32)
    p = jax.random.normal(kp, (B, D), dtype=jnp.float32)
    n = jax.random.normal(kn, (B, D), dtype=jnp.float32)

    out = jax.block_until_ready(triplet_loss(a, p, n))
    ref = jax.block_until_ready(triplet_loss_ref(a, p, n))
    assert jnp.allclose(out, ref, rtol=1e-5, atol=1e-5), (out, ref)

    # Case 2: multi-tile grid + ragged (unpadded) last tile, forced small tile.
    B2, D2 = 20, 32
    k2a, k2p, k2n = jax.random.split(jax.random.fold_in(key, 1), 3)
    a2 = jax.random.normal(k2a, (B2, D2), dtype=jnp.float32)
    p2 = jax.random.normal(k2p, (B2, D2), dtype=jnp.float32)
    n2 = jax.random.normal(k2n, (B2, D2), dtype=jnp.float32)

    out2 = jax.block_until_ready(triplet_loss(a2, p2, n2, tile_b=8))
    ref2 = jax.block_until_ready(triplet_loss_ref(a2, p2, n2))
    assert jnp.allclose(out2, ref2, rtol=1e-5, atol=1e-5), (out2, ref2)

    # Case 3: default (auto) tiling on the ragged batch — exercises the
    # >=2-balanced-tiles cap and the scalar-prefetch mask path together.
    out3 = jax.block_until_ready(triplet_loss(a2, p2, n2))
    assert jnp.allclose(out3, ref2, rtol=1e-5, atol=1e-5), (out3, ref2)

    print("KERNEL_OK")
</pallas_src>

<mosaic_0001>
module attributes {stable_mosaic.version = 11 : i64} {
  func.func @_triplet_kernel(%arg0: i32, %arg1: memref<1xi32, #tpu.memory_space<smem>>, %arg2: memref<8x32xf32, #tpu.memory_space<vmem>>, %arg3: memref<8x32xf32, #tpu.memory_space<vmem>>, %arg4: memref<8x32xf32, #tpu.memory_space<vmem>>, %arg5: memref<1x8x128xf32, #tpu.memory_space<vmem>>) attributes {dimension_semantics = [#tpu.dimension_semantics<parallel>], iteration_bounds = array<i64: 1>, scalar_prefetch = 1 : i64, scratch_operands = 0 : i64, tpu.core_type = #tpu.core_type<tc>, window_params = [{transform_indices = @transform_0, window_bounds = array<i64: 8, 32>}, {transform_indices = @transform_1, window_bounds = array<i64: 8, 32>}, {transform_indices = @transform_2, window_bounds = array<i64: 8, 32>}, {transform_indices = @transform_3, window_bounds = array<i64: 1, 8, 128>}]} {
    %c0 = arith.constant 0 : index
    %c0_0 = arith.constant 0 : index
    %0 = vector.load %arg2[%c0, %c0_0] : memref<8x32xf32, #tpu.memory_space<vmem>>, vector<8x32xf32>
    %c0_1 = arith.constant 0 : index
    %c0_2 = arith.constant 0 : index
    %1 = vector.load %arg3[%c0_1, %c0_2] : memref<8x32xf32, #tpu.memory_space<vmem>>, vector<8x32xf32>
    %c0_3 = arith.constant 0 : index
    %c0_4 = arith.constant 0 : index
    %2 = vector.load %arg4[%c0_3, %c0_4] : memref<8x32xf32, #tpu.memory_space<vmem>>, vector<8x32xf32>
    %3 = arith.subf %0, %1 : vector<8x32xf32>
    %cst = arith.constant 9.99999997E-7 : f32
    %4 = vector.broadcast %cst : f32 to vector<8x32xf32>
    %5 = arith.addf %3, %4 : vector<8x32xf32>
    %6 = arith.subf %0, %2 : vector<8x32xf32>
    %cst_5 = arith.constant 9.99999997E-7 : f32
    %7 = vector.broadcast %cst_5 : f32 to vector<8x32xf32>
    %8 = arith.addf %6, %7 : vector<8x32xf32>
    %9 = arith.mulf %5, %5 : vector<8x32xf32>
    %cst_6 = arith.constant dense<0.000000e+00> : vector<8xf32>
    %10 = vector.multi_reduction <add>, %9, %cst_6 [1] : vector<8x32xf32> to vector<8xf32>
    %11 = vector.shape_cast %10 : vector<8xf32> to vector<8x1xf32>
    %12 = arith.mulf %8, %8 : vector<8x32xf32>
    %cst_7 = arith.constant dense<0.000000e+00> : vector<8xf32>
    %13 = vector.multi_reduction <add>, %12, %cst_7 [1] : vector<8x32xf32> to vector<8xf32>
    %14 = vector.shape_cast %13 : vector<8xf32> to vector<8x1xf32>
    %15 = math.sqrt %11 : vector<8x1xf32>
    %16 = math.sqrt %14 : vector<8x1xf32>
    %17 = arith.subf %15, %16 : vector<8x1xf32>
    %cst_8 = arith.constant 2.000000e-01 : f32
    %18 = vector.broadcast %cst_8 : f32 to vector<8x1xf32>
    %19 = arith.addf %17, %18 : vector<8x1xf32>
    %cst_9 = arith.constant 0.000000e+00 : f32
    %20 = vector.broadcast %cst_9 : f32 to vector<8x1xf32>
    %21 = arith.maximumf %19, %20 : vector<8x1xf32>
    %c8_i32 = arith.constant 8 : i32
    %22 = arith.muli %arg0, %c8_i32 : i32
    %23 = tpu.iota {dimensions = array<i32: 0>} : vector<8x1xi32>
    %24 = vector.broadcast %22 : i32 to vector<8x1xi32>
    %25 = arith.addi %24, %23 : vector<8x1xi32>
    %c0_10 = arith.constant 0 : index
    %26 = memref.load %arg1[%c0_10] : memref<1xi32, #tpu.memory_space<smem>>
    %27 = vector.broadcast %26 : i32 to vector<8x1xi32>
    %28 = arith.cmpi slt, %25, %27 : vector<8x1xi32>
    %cst_11 = arith.constant 0.000000e+00 : f32
    %29 = vector.broadcast %cst_11 : f32 to vector<8x1xf32>
    %30 = arith.select %28, %21, %29 : vector<8x1xi1>, vector<8x1xf32>
    %31 = vector.shape_cast %30 : vector<8x1xf32> to vector<1x8x1xf32>
    %cst_12 = arith.constant dense<0.000000e+00> : vector<1xf32>
    %32 = vector.multi_reduction <add>, %31, %cst_12 [1, 2] : vector<1x8x1xf32> to vector<1xf32>
    %33 = vector.shape_cast %32 : vector<1xf32> to vector<1x1x1xf32>
    %34 = vector.extract %33[0, 0, 0] : f32 from vector<1x1x1xf32>
    %35 = vector.broadcast %34 : f32 to vector<1x8x128xf32>
    %c0_13 = arith.constant 0 : index
    %c0_14 = arith.constant 0 : index
    %c0_15 = arith.constant 0 : index
    %36 = vector.load %arg5[%c0_13, %c0_14, %c0_15] : memref<1x8x128xf32, #tpu.memory_space<vmem>>, vector<1x8x128xf32>
    tpu.vector_store %arg5[%c0_13, %c0_14, %c0_15], %35 {strides = array<i32>} : memref<1x8x128xf32, #tpu.memory_space<vmem>>, vector<1x8x128xf32>,
    return
  }
  func.func @transform_0(%arg0: i32, %arg1: memref<1xi32, #tpu.memory_space<smem>>) -> (i32, i32) {
    %c0_i32 = arith.constant 0 : i32
    %c0_i32_0 = arith.constant 0 : i32
    return %arg0, %c0_i32 : i32, i32
  }
  func.func @transform_1(%arg0: i32, %arg1: memref<1xi32, #tpu.memory_space<smem>>) -> (i32, i32) {
    %c0_i32 = arith.constant 0 : i32
    %c0_i32_0 = arith.constant 0 : i32
    return %arg0, %c0_i32 : i32, i32
  }
  func.func @transform_2(%arg0: i32, %arg1: memref<1xi32, #tpu.memory_space<smem>>) -> (i32, i32) {
    %c0_i32 = arith.constant 0 : i32
    %c0_i32_0 = arith.constant 0 : i32
    return %arg0, %c0_i32 : i32, i32
  }
  func.func @transform_3(%arg0: i32, %arg1: memref<1xi32, #tpu.memory_space<smem>>) -> (i32, i32, i32) {
    %c0_i32 = arith.constant 0 : i32
    %c0_i32_0 = arith.constant 0 : i32
    %c0_i32_1 = arith.constant 0 : i32
    return %arg0, %c0_i32, %c0_i32_0 : i32, i32, i32
  }
}

</mosaic_0001>

<bundles_post_ra>
// kernel: tpu_custom_call.1
= control target key start
LH: loop header
LB: loop body
LE: loop exit
PB: predicated region body
PF: predicated region fallthrough
CT: control target
= control target key end

     0   :  { %10 = vsyncpa [#allocation5], 0  ;;  %s263_s0 = inlined_call_operand.<no memory space> [shape: s32[1], index: 0, kind: input, shape index: {}]   ;;  %s264_s1 = inlined_call_operand.hbm [shape: f32[8,32], index: 1, kind: input, shape index: {}]   ;;  %s265_s2 = inlined_call_operand.hbm [shape: f32[8,32], index: 2, kind: input, shape index: {}]   ;;  %s266_s3 = inlined_call_operand.vmem [shape: f32[8,32], index: 3, kind: input, shape index: {}]   ;;  %s267_s4 = inlined_call_operand.hbm [shape: f32[1,8,128], index: 4, kind: output, shape index: {}]  }
   0x1   :  { %11 = vsyncpa [#allocation8], 0 }
   0x2   :  { %12 = vsyncpa [#allocation6], 0  ;;  %s193_s15 = smov [#allocation4]   ;;  %s194_s17 = smov [#allocation7]  }
   0x3   :  { %s19_s16 = sshll.u32 %s193_s15, 4  ;;  %s29_s18 = sshll.u32 %s194_s17, 4  ;;  %s20_s16 = int_to_ptr.vmem [resolvable:$true] %s19_s16  ;;  %s30_s18 = int_to_ptr.vmem [resolvable:$true] %s29_s18 }
   0x4   :  { %s121_s21 = scalar_lea.hbm %s264_s1, 128 }
   0x5   :  { %p122_p0 = scmp.ne.s32.totalorder %s264_s1, %s121_s21  ;;  %p125_p1 = scmp.lt.u32.totalorder %s121_s21, %s264_s1 }
   0x7   :  { %p127_p2 = pnand %p125_p1, %p122_p0 }
   0x9   :  { %130 = shalt.err (!%p127_p2)
}
   0xa   :  { %s131_s26 = scalar_lea.vmem %s20_s16, 128  ;;  %p136_p4 = scmp.lt.s32.totalorder %s20_s16, %s20_s16 }
   0xb   :  { %p132_p3 = scmp.ne.s32.totalorder %s20_s16, %s131_s26  ;;  %p137_p5 = scmp.lt.s32.totalorder %s131_s26, %s131_s26 }
   0xd   :  { %p138_p6 = por %p137_p5, %p136_p4 }
   0xf   :  { %p139_p7 = pnand %p138_p6, %p132_p3 }
  0x11   :  { %142 = shalt.err (!%p139_p7)
}
  0x12   :  { %22 = dma.hbm_to_vmem [thread:$0]  %s264_s1, 128, %s20_s16, [#allocation5]  }
  0x13   :  { %s143_s5 = scalar_lea.hbm %s265_s2, 128 }
  0x14   :  { %p144_p8 = scmp.ne.s32.totalorder %s265_s2, %s143_s5  ;;  %p147_p9 = scmp.lt.u32.totalorder %s143_s5, %s265_s2 }
  0x16   :  { %p149_p10 = pnand %p147_p9, %p144_p8 }
  0x18   :  { %152 = shalt.err (!%p149_p10)
}
  0x19   :  { %s153_s10 = scalar_lea.vmem %s30_s18, 128  ;;  %p158_p12 = scmp.lt.s32.totalorder %s30_s18, %s30_s18 }
  0x1a   :  { %p154_p11 = scmp.ne.s32.totalorder %s30_s18, %s153_s10  ;;  %p159_p13 = scmp.lt.s32.totalorder %s153_s10, %s153_s10 }
  0x1c   :  { %p160_p0 = por %p159_p13, %p158_p12 }
  0x1e   :  { %p161_p1 = pnand %p160_p0, %p154_p11 }
  0x20   :  { %164 = shalt.err (!%p161_p1)
}
  0x21   :  { %32 = dma.hbm_to_vmem [thread:$0]  %s265_s2, 128, %s30_s18, [#allocation8]  }
  0x22   :  { %187 = dma.done.wait [#allocation5], 128  }
  0x23   :  { %188 = vsyncadd [#allocation5], 4294967168 }
  0x24   :  { %189 = dma.done.wait [#allocation8], 128  }
  0x25   :  { %190 = vsyncadd [#allocation8], 4294967168  ;;  %v41_v0 = vld [vmem:[#allocation4] sm:$0xff]  ;;  %v42_v1 = vld [vmem:[#allocation7] sm:$0xff]  ;;  %vm49_vm0 = vcmask 261120   ;;  %v75_v16 = vlaneseq  ;;  %v80_v26 = vstv %s263_s0  ;;  %vm83_vm6 = vcmask 7168  }
  0x26   :  { %v43_v2 = vld [vmem:[%s266_s3] sm:$0xff]  ;;  %v44_v3 = vsub.f32 %v41_v0, %v42_v1  ;;  %s195_s14 = smov [#allocation9]  }
  0x27   :  { %v46_v4 = vsub.f32 %v41_v0, %v43_v2  ;;  %v76_v24 = vshrl.u32 %v75_v16, 7  ;;  %s102_s15 = sshll.u32 %s195_s14, 4  ;;  %s103_s15 = int_to_ptr.vmem [resolvable:$true] %s102_s15 }
  0x28   :  { %v45_v5 = vadd.f32 1e-06, %v44_v3  ;;  %s165_s0 = scalar_lea.vmem %s103_s15, 128  ;;  %p170_p3 = scmp.lt.s32.totalorder %s103_s15, %s103_s15 }
  0x29   :  { %v47_v6 = vadd.f32 1e-06, %v46_v4  ;;  %vm81_vm5 = vcmp.lt.s32.totalorder %v76_v24, %v80_v26  ;;  %p166_p2 = scmp.ne.s32.totalorder %s103_s15, %s165_s0  ;;  %p171_p4 = scmp.lt.s32.totalorder %s165_s0, %s165_s0 }
  0x2a   :  { %v48_v7 = vmul.f32 %v45_v5, %v45_v5 }
  0x2b   :  { %v53_v8 = vmul.f32 %v47_v6, %v47_v6  ;;  %p172_p5 = por %p171_p4, %p170_p3 }
  0x2c   :  { %v50_v9 = vsel %vm49_vm0, %v48_v7, 0.0 }
  0x2d   :  { %51 = vadd.xlane.f32.xlu0 %v50_v9  ;;  %v54_v10 = vsel %vm49_vm0, %v53_v8, 0.0  ;;  %p173_p6 = pnand %p172_p5, %p166_p2 }
  0x31   :  { %55 = vadd.xlane.f32.xlu0 %v54_v10 }
  0xba   :  { %v52_v11 = vpop.xlane.xlu0 %51 }
  0xbb   :  { %117 = vrsqrt.f32 %v52_v11  ;;  %vm59_vm1 = vcmp.eq.f32.partialorder %v52_v11, inf  ;;  %v62_v20 = vand.u32 2147483648, %v52_v11  ;;  %vm61_vm3 = vcmp.eq.f32.partialorder %v52_v11, 0.0 }
  0xbe   :  { %v56_v12 = vpop.xlane.xlu0 %55 }
  0xbf   :  { %119 = vrsqrt.f32 %v56_v12  ;;  %vm66_vm2 = vcmp.eq.f32.partialorder %v56_v12, inf  ;;  %v69_v19 = vand.u32 2147483648, %v56_v12  ;;  %vm68_vm4 = vcmp.eq.f32.partialorder %v56_v12, 0.0 }
  0xc5   :  { %v118_v13 = vpop.eup %117 }
  0xc6   :  { %v58_v14 = vmul.f32 %v118_v13, %v52_v11 }
  0xc8   :  { %v60_v18 = vsel %vm59_vm1, %v52_v11, %v58_v14 }
  0xc9   :  { %v120_v15 = vpop.eup %119  ;;  %v63_v22 = vsel %vm61_vm3, %v62_v20, %v60_v18 }
  0xca   :  { %v65_v17 = vmul.f32 %v120_v15, %v56_v12 }
  0xcc   :  { %v67_v21 = vsel %vm66_vm2, %v56_v12, %v65_v17 }
  0xcd   :  { %v70_v23 = vsel %vm68_vm4, %v69_v19, %v67_v21 }
  0xce   :  { %v71_v25 = vsub.f32 %v63_v22, %v70_v23 }
  0xd0   :  { %v72_v27 = vadd.f32 0.2, %v71_v25 }
  0xd2   :  { %v73_v28 = vmax.f32 %v72_v27, 0.0 }
  0xd4   :  { %v82_v29 = vsel %vm81_vm5, %v73_v28, 0.0 }
  0xd5   :  { %v84_v30 = vsel %vm83_vm6, %v82_v29, 0.0 }
  0xd6   :  { %85 = vadd.xlane.f32.xlu1 %v84_v30 }
 0x163   :  { %v86_v31 = vpop.xlane.xlu1 %85 }
 0x164   :  { %v87_v32 = vrot.slane %v86_v31, 4 }
 0x166   :  { %v88_v33 = vadd.f32 %v87_v32, %v86_v31 }
 0x168   :  { %v89_v34 = vrot.slane %v88_v33, 2 }
 0x16a   :  { %v90_v35 = vadd.f32 %v89_v34, %v88_v33 }
 0x16c   :  { %v91_v36 = vrot.slane %v90_v35, 1 }
 0x16e   :  { %v92_v37 = vadd.f32 %v91_v36, %v90_v35 }
 0x170   :  { %112 = vpush %v92_v37 }
 0x1a1   :  { %s113_s16 = spop %112 }
 0x1a2   :  { %v94_v38 = vstv %s113_s16 }
 0x1a3   :  { %95 = vst [vmem:[#allocation9] sm:$0xff] %v94_v38 }
 0x1a4   :  { %176 = shalt.err (!%p173_p6)
}
 0x1a5   :  { %s177_s19 = scalar_lea.hbm %s267_s4, 128 }
 0x1a6   :  { %p178_p7 = scmp.ne.s32.totalorder %s267_s4, %s177_s19  ;;  %p181_p8 = scmp.lt.u32.totalorder %s177_s19, %s267_s4 }
 0x1a8   :  { %p183_p9 = pnand %p181_p8, %p178_p7 }
 0x1aa   :  { %186 = shalt.err (!%p183_p9)
}
 0x1ab   :  { %105 = dma.vmem_to_hbm [thread:$0]  %s103_s15, 128, %s267_s4, [#allocation6]  }
 0x1ac   :  { %191 = dma.done.wait [#allocation6], 128  }
 0x1ad   :  { %192 = vsyncadd [#allocation6], 4294967168 }
 0x1ae   :  { %109 = vsyncpa [#allocation5], 1 }
 0x1af   :  { %110 = vsyncpa [#allocation8], 1 }
 0x1b0   :  { %111 = vsyncpa [#allocation6], 1 }

</bundles_post_ra>
